<compile_context>
chip_gen: v7x
topology: tpu7x:2x2x1
jax: 0.10.0
libtpu: 0.0.40
codegen_flags: <defaults>
</compile_context>

<pallas_src>
import functools
import math

import jax
import jax.numpy as jnp
from jax import lax
from jax.experimental import pallas as pl
from jax.experimental.pallas import tpu as pltpu

# ----------------------------- model constants ------------------------------
B = 2           # batch
S = 8           # seq_len
D = 32          # d_model
NH = 4          # n_heads
HD = D // NH    # head_dim
HIDDEN = 64     # feed-forward hidden size
EPS = 1e-5
ROPE_THETA = 10000.0

# Contract the last dim of both operands (A @ B^T) without materializing B^T;
# identical dimension_numbers to the official Pallas TPU flash-attention kernel.
_NT_DIMS = (((1,), (1,)), ((), ()))


def _rmsnorm(v, w, eps):
    var = jnp.mean(v * v, axis=-1, keepdims=True)
    return v * lax.rsqrt(var + eps) * w


# ------------------------------- Pallas kernel ------------------------------
def _block_kernel(x_ref, anw_ref, wqkv_ref, wo_ref, fnw_ref, w13_ref, w2_ref,
                  cos_ref, sin_ref, out_ref, an_ref, *, nh, hd, hidden, eps):
    h_idx = pl.program_id(1)          # head index (innermost, "arbitrary")
    half = hd // 2

    # ---- per-batch prologue: runs once, on the first head iteration -------
    @pl.when(h_idx == 0)
    def _():
        x = x_ref[...]                                        # (S, D) f32
        an_ref[...] = _rmsnorm(x, anw_ref[...], eps).astype(jnp.bfloat16)
        out_ref[...] = x            # residual accumulator, stays f32

    an = an_ref[...]                                          # (S, D) bf16

    # ---- this head's fused Q|K|V projection (weights chosen by BlockSpec) -
    # 1/sqrt(head_dim) is pre-folded into the Q columns by the wrapper.
    qkv = jnp.dot(an, wqkv_ref[...],
                  preferred_element_type=jnp.float32)         # (S, 3*HD) f32

    q1, q2 = qkv[:, 0:half], qkv[:, half:hd]
    k1, k2 = qkv[:, hd:hd + half], qkv[:, hd + half:2 * hd]
    v = qkv[:, 2 * hd:3 * hd].astype(jnp.bfloat16)

    # ---- RoPE, split-half form; cos/sin already exactly (S, HD/2) ----------
    cos = cos_ref[...]
    sin = sin_ref[...]
    q1r = (q1 * cos - q2 * sin).astype(jnp.bfloat16)
    q2r = (q2 * cos + q1 * sin).astype(jnp.bfloat16)
    k1r = (k1 * cos - k2 * sin).astype(jnp.bfloat16)
    k2r = (k2 * cos + k1 * sin).astype(jnp.bfloat16)

    # ---- causal attention for this head ------------------------------------
    scores = (lax.dot_general(q1r, k1r, _NT_DIMS,
                              preferred_element_type=jnp.float32) +
              lax.dot_general(q2r, k2r, _NT_DIMS,
                              preferred_element_type=jnp.float32))   # (S, S)

    s = scores.shape[0]
    row = lax.broadcasted_iota(jnp.int32, (s, s), 0)
    col = lax.broadcasted_iota(jnp.int32, (s, s), 1)
    scores = jnp.where(col <= row, scores, -1e30)   # scores stay f32, safe
    # TODO(synk): intra-document masking (max_doc_len / cu_doc_lens) not implemented.

    m = jnp.max(scores, axis=-1, keepdims=True)
    p = jnp.exp(scores - m)
    denom = jnp.sum(p, axis=-1, keepdims=True)
    p = (p * pl.reciprocal(denom, approx=True)).astype(jnp.bfloat16)

    ctx = jnp.dot(p, v, preferred_element_type=jnp.float32)   # (S, HD)

    # ---- accumulate this head's output-projection contribution -------------
    # sum_h  ctx_h @ wo[h*HD:(h+1)*HD, :]  ==  concat_h(ctx_h) @ wo
    out_ref[...] += jnp.dot(ctx.astype(jnp.bfloat16), wo_ref[...],
                            preferred_element_type=jnp.float32)

    # ---- per-batch epilogue: SwiGLU feed-forward on the last head ----------
    @pl.when(h_idx == nh - 1)
    def _():
        h1 = out_ref[...]                                     # x + attn (f32)
        fn = _rmsnorm(h1, fnw_ref[...], eps).astype(jnp.bfloat16)
        gu = jnp.dot(fn, w13_ref[...],
                     preferred_element_type=jnp.float32)      # (S, 2*HIDDEN)
        g, u = gu[:, :hidden], gu[:, hidden:]
        act = (g * jax.nn.sigmoid(g) * u).astype(jnp.bfloat16)
        ff = jnp.dot(act, w2_ref[...], preferred_element_type=jnp.float32)
        out_ref[...] = h1 + ff


# --------------------------------- wrapper ----------------------------------
def transformer_block(x, params, cos_half, sin_half):
    b, s, d = x.shape
    nh, hd = NH, HD
    hidden = params["w1"].shape[1]
    scale = 1.0 / math.sqrt(hd)

    # Per-head weight slabs (NH, D, 3*HD): a BlockSpec index_map selects head
    # h's columns, so no per-head relayout happens inside the kernel.
    wq_h = (params["wq"] * scale).reshape(d, nh, hd).transpose(1, 0, 2)
    wk_h = params["wk"].reshape(d, nh, hd).transpose(1, 0, 2)
    wv_h = params["wv"].reshape(d, nh, hd).transpose(1, 0, 2)
    wqkv_h = jnp.concatenate([wq_h, wk_h, wv_h], axis=-1).astype(jnp.bfloat16)
    wo_h = params["wo"].reshape(nh, hd, d).astype(jnp.bfloat16)   # (NH, HD, D)
    w13 = jnp.concatenate([params["w1"], params["w3"]],
                          axis=1).astype(jnp.bfloat16)            # (D, 2*HIDDEN)
    w2 = params["w2"].astype(jnp.bfloat16)                        # (HIDDEN, D)

    kernel = functools.partial(_block_kernel, nh=nh, hd=hd, hidden=hidden,
                               eps=EPS)

    per_batch = lambda bi, hi: (bi, 0, 0)     # block follows the batch axis
    per_head = lambda bi, hi: (hi, 0, 0)      # block follows the head axis
    fixed2 = lambda bi, hi: (0, 0)            # resident weight / table

    grid_spec = pltpu.PrefetchScalarGridSpec(
        num_scalar_prefetch=0,
        grid=(b, nh),
        in_specs=[
            pl.BlockSpec((None, s, d), per_batch),        # x
            pl.BlockSpec((1, d), fixed2),                 # attn_norm weight
            pl.BlockSpec((None, d, 3 * hd), per_head),    # fused per-head QKV
            pl.BlockSpec((None, hd, d), per_head),        # wo row-block
            pl.BlockSpec((1, d), fixed2),                 # ff_norm weight
            pl.BlockSpec((d, 2 * hidden), fixed2),        # w1 | w3
            pl.BlockSpec((hidden, d), fixed2),            # w2
            pl.BlockSpec((s, hd // 2), fixed2),           # RoPE cos (half)
            pl.BlockSpec((s, hd // 2), fixed2),           # RoPE sin (half)
        ],
        out_specs=pl.BlockSpec((None, s, d), per_batch),
        scratch_shapes=[pltpu.VMEM((s, d), jnp.bfloat16)],   # RMSNorm(x)
    )

    out = pl.pallas_call(
        kernel,
        out_shape=jax.ShapeDtypeStruct((b, s, d), jnp.float32),
        grid_spec=grid_spec,
        compiler_params=pltpu.CompilerParams(
            dimension_semantics=("parallel", "arbitrary"),
            vmem_limit_bytes=32 * 1024 * 1024,
        ),
    )(x, params["attn_norm"], wqkv_h, wo_h,
      params["ff_norm"], w13, w2, cos_half, sin_half)
    return out


# ------------------------------ pure-JAX reference ---------------------------
def reference_block(x, params, cos, sin):
    def rmsnorm(v, w):
        return v * lax.rsqrt(jnp.mean(v * v, -1, keepdims=True) + EPS) * w

    def rotate_half(t):
        t1, t2 = t[..., :HD // 2], t[..., HD // 2:]
        return jnp.concatenate([-t2, t1], axis=-1)

    an = rmsnorm(x, params["attn_norm"])
    q = (an @ params["wq"]).reshape(B, S, NH, HD)
    k = (an @ params["wk"]).reshape(B, S, NH, HD)
    v = (an @ params["wv"]).reshape(B, S, NH, HD)

    c = cos[None, :, None, :]
    s = sin[None, :, None, :]
    q = q * c + rotate_half(q) * s
    k = k * c + rotate_half(k) * s

    scores = jnp.einsum("bqhd,bkhd->bhqk", q, k) / math.sqrt(HD)
    mask = jnp.tril(jnp.ones((S, S), bool))
    scores = jnp.where(mask[None, None], scores, -1e30)
    probs = jax.nn.softmax(scores, axis=-1)
    attn = jnp.einsum("bhqk,bkhd->bqhd", probs, v).reshape(B, S, D)
    h1 = x + attn @ params["wo"]

    fn = rmsnorm(h1, params["ff_norm"])
    ff = (jax.nn.silu(fn @ params["w1"]) * (fn @ params["w3"])) @ params["w2"]
    return h1 + ff


# ----------------------------------- main ------------------------------------
if __name__ == "__main__":
    key = jax.random.PRNGKey(0)
    keys = jax.random.split(key, 8)

    params = {
        "attn_norm": jnp.ones((1, D), jnp.float32),
        "ff_norm": jnp.ones((1, D), jnp.float32),
        "wq": 0.05 * jax.random.normal(keys[0], (D, D), jnp.float32),
        "wk": 0.05 * jax.random.normal(keys[1], (D, D), jnp.float32),
        "wv": 0.05 * jax.random.normal(keys[2], (D, D), jnp.float32),
        "wo": 0.05 * jax.random.normal(keys[3], (D, D), jnp.float32),
        "w1": 0.05 * jax.random.normal(keys[4], (D, HIDDEN), jnp.float32),
        "w3": 0.05 * jax.random.normal(keys[5], (D, HIDDEN), jnp.float32),
        "w2": 0.05 * jax.random.normal(keys[6], (HIDDEN, D), jnp.float32),
    }

    # RoPE tables: half tables (S, HD/2) for the kernel (split-half form),
    # full (S, HD) tables for the pure-JAX reference.
    inv_freq = 1.0 / (ROPE_THETA ** (jnp.arange(0, HD, 2, dtype=jnp.float32) / HD))
    pos = jnp.arange(S, dtype=jnp.float32)
    freqs = jnp.einsum("s,f->sf", pos, inv_freq)            # (S, HD/2)
    cos_half, sin_half = jnp.cos(freqs), jnp.sin(freqs)
    emb = jnp.concatenate([freqs, freqs], axis=-1)          # (S, HD)
    cos_full, sin_full = jnp.cos(emb), jnp.sin(emb)

    x = jax.random.normal(keys[7], (B, S, D), jnp.float32)

    out = transformer_block(x, params, cos_half, sin_half)
    out = jax.block_until_ready(out)

    ref = reference_block(x, params, cos_full, sin_full)
    assert out.shape == (B, S, D)
    assert jnp.allclose(out, ref, atol=2e-2, rtol=2e-2), "mismatch vs reference"

    print("KERNEL_OK")
</pallas_src>

<mosaic_0001>
module attributes {stable_mosaic.version = 11 : i64} {
  func.func @_block_kernel(%arg0: i32, %arg1: i32, %arg2: memref<1x8x32xf32, #tpu.memory_space<vmem>>, %arg3: memref<1x32xf32, #tpu.memory_space<vmem>>, %arg4: memref<1x32x24xbf16, #tpu.memory_space<vmem>>, %arg5: memref<1x8x32xbf16, #tpu.memory_space<vmem>>, %arg6: memref<1x32xf32, #tpu.memory_space<vmem>>, %arg7: memref<32x128xbf16, #tpu.memory_space<vmem>>, %arg8: memref<64x32xbf16, #tpu.memory_space<vmem>>, %arg9: memref<8x4xf32, #tpu.memory_space<vmem>>, %arg10: memref<8x4xf32, #tpu.memory_space<vmem>>, %arg11: memref<1x8x32xf32, #tpu.memory_space<vmem>>, %arg12: memref<8x32xbf16, #tpu.memory_space<vmem>>) attributes {dimension_semantics = [#tpu.dimension_semantics<parallel>, #tpu.dimension_semantics<arbitrary>], iteration_bounds = array<i64: 2, 4>, scalar_prefetch = 0 : i64, scratch_operands = 1 : i64, tpu.core_type = #tpu.core_type<tc>, window_params = [{transform_indices = @transform_0, window_bounds = array<i64: 1, 8, 32>}, {pipeline_mode = #tpu.pipeline_mode<synchronous>, transform_indices = @transform_1, window_bounds = array<i64: 1, 32>}, {transform_indices = @transform_2, window_bounds = array<i64: 1, 32, 24>}, {transform_indices = @transform_3, window_bounds = array<i64: 1, 8, 32>}, {pipeline_mode = #tpu.pipeline_mode<synchronous>, transform_indices = @transform_4, window_bounds = array<i64: 1, 32>}, {pipeline_mode = #tpu.pipeline_mode<synchronous>, transform_indices = @transform_5, window_bounds = array<i64: 32, 128>}, {pipeline_mode = #tpu.pipeline_mode<synchronous>, transform_indices = @transform_6, window_bounds = array<i64: 64, 32>}, {pipeline_mode = #tpu.pipeline_mode<synchronous>, transform_indices = @transform_7, window_bounds = array<i64: 8, 4>}, {pipeline_mode = #tpu.pipeline_mode<synchronous>, transform_indices = @transform_8, window_bounds = array<i64: 8, 4>}, {transform_indices = @transform_9, window_bounds = array<i64: 1, 8, 32>}]} {
    %c0_i32 = arith.constant 0 : i32
    %0 = arith.cmpi eq, %arg1, %c0_i32 : i32
    %1 = arith.extui %0 : i1 to i32
    %c0_i32_0 = arith.constant 0 : i32
    %2 = arith.cmpi ne, %1, %c0_i32_0 : i32
    scf.if %2 {
      %c0_26 = arith.constant 0 : index
      %c0_27 = arith.constant 0 : index
      %c0_28 = arith.constant 0 : index
      %64 = vector.load %arg2[%c0_26, %c0_27, %c0_28] : memref<1x8x32xf32, #tpu.memory_space<vmem>>, vector<1x8x32xf32>
      %65 = vector.shape_cast %64 : vector<1x8x32xf32> to vector<8x32xf32>
      %c0_29 = arith.constant 0 : index
      %c0_30 = arith.constant 0 : index
      %66 = vector.load %arg3[%c0_29, %c0_30] : memref<1x32xf32, #tpu.memory_space<vmem>>, vector<1x32xf32>
      %67 = arith.mulf %65, %65 : vector<8x32xf32>
      %cst_31 = arith.constant dense<0.000000e+00> : vector<8xf32>
      %68 = vector.multi_reduction <add>, %67, %cst_31 [1] : vector<8x32xf32> to vector<8xf32>
      %69 = vector.shape_cast %68 : vector<8xf32> to vector<8x1xf32>
      %cst_32 = arith.constant 3.200000e+01 : f32
      %70 = vector.broadcast %cst_32 : f32 to vector<8x1xf32>
      %71 = arith.divf %69, %70 : vector<8x1xf32>
      %cst_33 = arith.constant 9.99999974E-6 : f32
      %72 = vector.broadcast %cst_33 : f32 to vector<8x1xf32>
      %73 = arith.addf %71, %72 : vector<8x1xf32>
      %74 = math.rsqrt %73 : vector<8x1xf32>
      %75 = vector.broadcast %74 : vector<8x1xf32> to vector<8x32xf32>
      %76 = arith.mulf %65, %75 : vector<8x32xf32>
      %77 = vector.broadcast %66 : vector<1x32xf32> to vector<8x32xf32>
      %78 = arith.mulf %76, %77 : vector<8x32xf32>
      %79 = arith.truncf %78 : vector<8x32xf32> to vector<8x32xbf16>
      %c0_34 = arith.constant 0 : index
      %c0_35 = arith.constant 0 : index
      %80 = vector.load %arg12[%c0_34, %c0_35] : memref<8x32xbf16, #tpu.memory_space<vmem>>, vector<8x32xbf16>
      tpu.vector_store %arg12[%c0_34, %c0_35], %79 {strides = array<i32>} : memref<8x32xbf16, #tpu.memory_space<vmem>>, vector<8x32xbf16>,
      %c0_36 = arith.constant 0 : index
      %c0_37 = arith.constant 0 : index
      %c0_38 = arith.constant 0 : index
      %81 = vector.load %arg11[%c0_36, %c0_37, %c0_38] : memref<1x8x32xf32, #tpu.memory_space<vmem>>, vector<1x8x32xf32>
      %82 = vector.shape_cast %81 : vector<1x8x32xf32> to vector<8x32xf32>
      %83 = vector.shape_cast %65 : vector<8x32xf32> to vector<1x8x32xf32>
      tpu.vector_store %arg11[%c0_36, %c0_37, %c0_38], %83 {strides = array<i32>} : memref<1x8x32xf32, #tpu.memory_space<vmem>>, vector<1x8x32xf32>,
    } else {
    }
    %c0 = arith.constant 0 : index
    %c0_1 = arith.constant 0 : index
    %3 = vector.load %arg12[%c0, %c0_1] : memref<8x32xbf16, #tpu.memory_space<vmem>>, vector<8x32xbf16>
    %c0_2 = arith.constant 0 : index
    %c0_3 = arith.constant 0 : index
    %c0_4 = arith.constant 0 : index
    %4 = vector.load %arg4[%c0_2, %c0_3, %c0_4] : memref<1x32x24xbf16, #tpu.memory_space<vmem>>, vector<1x32x24xbf16>
    %5 = vector.shape_cast %4 : vector<1x32x24xbf16> to vector<32x24xbf16>
    %cst = arith.constant dense<0.000000e+00> : vector<8x24xf32>
    %6 = tpu.matmul %3, %5, %cst {dimension_numbers = #tpu.dot_dimension_numbers<[1], [0], [0], [1], [0, 0, 1, 1], [], []>} : vector<8x32xbf16>, vector<32x24xbf16>, vector<8x24xf32> -> vector<8x24xf32>
    %7 = vector.extract_strided_slice %6 {offsets = [0, 0], sizes = [8, 4], strides = [1, 1]} : vector<8x24xf32> to vector<8x4xf32>
    %8 = vector.extract_strided_slice %6 {offsets = [0, 4], sizes = [8, 4], strides = [1, 1]} : vector<8x24xf32> to vector<8x4xf32>
    %9 = vector.extract_strided_slice %6 {offsets = [0, 8], sizes = [8, 4], strides = [1, 1]} : vector<8x24xf32> to vector<8x4xf32>
    %10 = vector.extract_strided_slice %6 {offsets = [0, 12], sizes = [8, 4], strides = [1, 1]} : vector<8x24xf32> to vector<8x4xf32>
    %11 = vector.extract_strided_slice %6 {offsets = [0, 16], sizes = [8, 8], strides = [1, 1]} : vector<8x24xf32> to vector<8x8xf32>
    %12 = arith.truncf %11 : vector<8x8xf32> to vector<8x8xbf16>
    %c0_5 = arith.constant 0 : index
    %c0_6 = arith.constant 0 : index
    %13 = vector.load %arg9[%c0_5, %c0_6] : memref<8x4xf32, #tpu.memory_space<vmem>>, vector<8x4xf32>
    %c0_7 = arith.constant 0 : index
    %c0_8 = arith.constant 0 : index
    %14 = vector.load %arg10[%c0_7, %c0_8] : memref<8x4xf32, #tpu.memory_space<vmem>>, vector<8x4xf32>
    %15 = arith.mulf %7, %13 : vector<8x4xf32>
    %16 = arith.mulf %8, %14 : vector<8x4xf32>
    %17 = arith.subf %15, %16 : vector<8x4xf32>
    %18 = arith.truncf %17 : vector<8x4xf32> to vector<8x4xbf16>
    %19 = arith.mulf %8, %13 : vector<8x4xf32>
    %20 = arith.mulf %7, %14 : vector<8x4xf32>
    %21 = arith.addf %19, %20 : vector<8x4xf32>
    %22 = arith.truncf %21 : vector<8x4xf32> to vector<8x4xbf16>
    %23 = arith.mulf %9, %13 : vector<8x4xf32>
    %24 = arith.mulf %10, %14 : vector<8x4xf32>
    %25 = arith.subf %23, %24 : vector<8x4xf32>
    %26 = arith.truncf %25 : vector<8x4xf32> to vector<8x4xbf16>
    %27 = arith.mulf %10, %13 : vector<8x4xf32>
    %28 = arith.mulf %9, %14 : vector<8x4xf32>
    %29 = arith.addf %27, %28 : vector<8x4xf32>
    %30 = arith.truncf %29 : vector<8x4xf32> to vector<8x4xbf16>
    %cst_9 = arith.constant dense<0.000000e+00> : vector<8x8xf32>
    %31 = tpu.matmul %18, %26, %cst_9 {dimension_numbers = #tpu.dot_dimension_numbers<[1], [1], [0], [0], [0, 0, 1, 0], [], []>} : vector<8x4xbf16>, vector<8x4xbf16>, vector<8x8xf32> -> vector<8x8xf32>
    %cst_10 = arith.constant dense<0.000000e+00> : vector<8x8xf32>
    %32 = tpu.matmul %22, %30, %cst_10 {dimension_numbers = #tpu.dot_dimension_numbers<[1], [1], [0], [0], [0, 0, 1, 0], [], []>} : vector<8x4xbf16>, vector<8x4xbf16>, vector<8x8xf32> -> vector<8x8xf32>
    %33 = arith.addf %31, %32 : vector<8x8xf32>
    %34 = tpu.iota {dimensions = array<i32: 0>} : vector<8x8xi32>
    %35 = tpu.iota {dimensions = array<i32: 1>} : vector<8x8xi32>
    %36 = arith.cmpi sle, %35, %34 : vector<8x8xi32>
    %cst_11 = arith.constant -1.000000e+30 : f32
    %37 = vector.broadcast %cst_11 : f32 to vector<8x8xf32>
    %38 = arith.select %36, %33, %37 : vector<8x8xi1>, vector<8x8xf32>
    %cst_12 = arith.constant dense<0xFF800000> : vector<8xf32>
    %39 = vector.multi_reduction <maximumf>, %38, %cst_12 [1] : vector<8x8xf32> to vector<8xf32>
    %40 = vector.shape_cast %39 : vector<8xf32> to vector<8x1xf32>
    %41 = vector.broadcast %40 : vector<8x1xf32> to vector<8x8xf32>
    %42 = arith.subf %38, %41 : vector<8x8xf32>
    %43 = math.exp %42 : vector<8x8xf32>
    %cst_13 = arith.constant dense<0.000000e+00> : vector<8xf32>
    %44 = vector.multi_reduction <add>, %43, %cst_13 [1] : vector<8x8xf32> to vector<8xf32>
    %45 = vector.shape_cast %44 : vector<8xf32> to vector<8x1xf32>
    %46 = tpu.reciprocal %45 {approx = true} : vector<8x1xf32> -> vector<8x1xf32>
    %47 = vector.broadcast %46 : vector<8x1xf32> to vector<8x8xf32>
    %48 = arith.mulf %43, %47 : vector<8x8xf32>
    %49 = arith.truncf %48 : vector<8x8xf32> to vector<8x8xbf16>
    %cst_14 = arith.constant dense<0.000000e+00> : vector<8x8xf32>
    %50 = tpu.matmul %49, %12, %cst_14 {dimension_numbers = #tpu.dot_dimension_numbers<[1], [0], [0], [1], [0, 0, 1, 1], [], []>} : vector<8x8xbf16>, vector<8x8xbf16>, vector<8x8xf32> -> vector<8x8xf32>
    %c0_15 = arith.constant 0 : index
    %c0_16 = arith.constant 0 : index
    %c0_17 = arith.constant 0 : index
    %51 = vector.load %arg11[%c0_15, %c0_16, %c0_17] : memref<1x8x32xf32, #tpu.memory_space<vmem>>, vector<1x8x32xf32>
    %52 = vector.shape_cast %51 : vector<1x8x32xf32> to vector<8x32xf32>
    %53 = arith.truncf %50 : vector<8x8xf32> to vector<8x8xbf16>
    %c0_18 = arith.constant 0 : index
    %c0_19 = arith.constant 0 : index
    %c0_20 = arith.constant 0 : index
    %54 = vector.load %arg5[%c0_18, %c0_19, %c0_20] : memref<1x8x32xbf16, #tpu.memory_space<vmem>>, vector<1x8x32xbf16>
    %55 = vector.shape_cast %54 : vector<1x8x32xbf16> to vector<8x32xbf16>
    %cst_21 = arith.constant dense<0.000000e+00> : vector<8x32xf32>
    %56 = tpu.matmul %53, %55, %cst_21 {dimension_numbers = #tpu.dot_dimension_numbers<[1], [0], [0], [1], [0, 0, 1, 1], [], []>} : vector<8x8xbf16>, vector<8x32xbf16>, vector<8x32xf32> -> vector<8x32xf32>
    %57 = arith.addf %52, %56 : vector<8x32xf32>
    %c0_22 = arith.constant 0 : index
    %c0_23 = arith.constant 0 : index
    %c0_24 = arith.constant 0 : index
    %58 = vector.load %arg11[%c0_22, %c0_23, %c0_24] : memref<1x8x32xf32, #tpu.memory_space<vmem>>, vector<1x8x32xf32>
    %59 = vector.shape_cast %58 : vector<1x8x32xf32> to vector<8x32xf32>
    %60 = vector.shape_cast %57 : vector<8x32xf32> to vector<1x8x32xf32>
    tpu.vector_store %arg11[%c0_22, %c0_23, %c0_24], %60 {strides = array<i32>} : memref<1x8x32xf32, #tpu.memory_space<vmem>>, vector<1x8x32xf32>,
    %c3_i32 = arith.constant 3 : i32
    %61 = arith.cmpi eq, %arg1, %c3_i32 : i32
    %62 = arith.extui %61 : i1 to i32
    %c0_i32_25 = arith.constant 0 : i32
    %63 = arith.cmpi ne, %62, %c0_i32_25 : i32
    scf.if %63 {
      %c0_26 = arith.constant 0 : index
      %c0_27 = arith.constant 0 : index
      %c0_28 = arith.constant 0 : index
      %64 = vector.load %arg11[%c0_26, %c0_27, %c0_28] : memref<1x8x32xf32, #tpu.memory_space<vmem>>, vector<1x8x32xf32>
      %65 = vector.shape_cast %64 : vector<1x8x32xf32> to vector<8x32xf32>
      %c0_29 = arith.constant 0 : index
      %c0_30 = arith.constant 0 : index
      %66 = vector.load %arg6[%c0_29, %c0_30] : memref<1x32xf32, #tpu.memory_space<vmem>>, vector<1x32xf32>
      %67 = arith.mulf %65, %65 : vector<8x32xf32>
      %cst_31 = arith.constant dense<0.000000e+00> : vector<8xf32>
      %68 = vector.multi_reduction <add>, %67, %cst_31 [1] : vector<8x32xf32> to vector<8xf32>
      %69 = vector.shape_cast %68 : vector<8xf32> to vector<8x1xf32>
      %cst_32 = arith.constant 3.200000e+01 : f32
      %70 = vector.broadcast %cst_32 : f32 to vector<8x1xf32>
      %71 = arith.divf %69, %70 : vector<8x1xf32>
      %cst_33 = arith.constant 9.99999974E-6 : f32
      %72 = vector.broadcast %cst_33 : f32 to vector<8x1xf32>
      %73 = arith.addf %71, %72 : vector<8x1xf32>
      %74 = math.rsqrt %73 : vector<8x1xf32>
      %75 = vector.broadcast %74 : vector<8x1xf32> to vector<8x32xf32>
      %76 = arith.mulf %65, %75 : vector<8x32xf32>
      %77 = vector.broadcast %66 : vector<1x32xf32> to vector<8x32xf32>
      %78 = arith.mulf %76, %77 : vector<8x32xf32>
      %79 = arith.truncf %78 : vector<8x32xf32> to vector<8x32xbf16>
      %c0_34 = arith.constant 0 : index
      %c0_35 = arith.constant 0 : index
      %80 = vector.load %arg7[%c0_34, %c0_35] : memref<32x128xbf16, #tpu.memory_space<vmem>>, vector<32x128xbf16>
      %cst_36 = arith.constant dense<0.000000e+00> : vector<8x128xf32>
      %81 = tpu.matmul %79, %80, %cst_36 {dimension_numbers = #tpu.dot_dimension_numbers<[1], [0], [0], [1], [0, 0, 1, 1], [], []>} : vector<8x32xbf16>, vector<32x128xbf16>, vector<8x128xf32> -> vector<8x128xf32>
      %82 = vector.extract_strided_slice %81 {offsets = [0, 0], sizes = [8, 64], strides = [1, 1]} : vector<8x128xf32> to vector<8x64xf32>
      %83 = vector.extract_strided_slice %81 {offsets = [0, 64], sizes = [8, 64], strides = [1, 1]} : vector<8x128xf32> to vector<8x64xf32>
      %84 = arith.negf %82 : vector<8x64xf32>
      %85 = math.exp %84 : vector<8x64xf32>
      %cst_37 = arith.constant 1.000000e+00 : f32
      %86 = vector.broadcast %cst_37 : f32 to vector<8x64xf32>
      %87 = arith.addf %86, %85 : vector<8x64xf32>
      %88 = arith.divf %86, %87 : vector<8x64xf32>
      %89 = arith.mulf %82, %88 : vector<8x64xf32>
      %90 = arith.mulf %89, %83 : vector<8x64xf32>
      %91 = arith.truncf %90 : vector<8x64xf32> to vector<8x64xbf16>
      %c0_38 = arith.constant 0 : index
      %c0_39 = arith.constant 0 : index
      %92 = vector.load %arg8[%c0_38, %c0_39] : memref<64x32xbf16, #tpu.memory_space<vmem>>, vector<64x32xbf16>
      %cst_40 = arith.constant dense<0.000000e+00> : vector<8x32xf32>
      %93 = tpu.matmul %91, %92, %cst_40 {dimension_numbers = #tpu.dot_dimension_numbers<[1], [0], [0], [1], [0, 0, 1, 1], [], []>} : vector<8x64xbf16>, vector<64x32xbf16>, vector<8x32xf32> -> vector<8x32xf32>
      %94 = arith.addf %65, %93 : vector<8x32xf32>
      %c0_41 = arith.constant 0 : index
      %c0_42 = arith.constant 0 : index
      %c0_43 = arith.constant 0 : index
      %95 = vector.load %arg11[%c0_41, %c0_42, %c0_43] : memref<1x8x32xf32, #tpu.memory_space<vmem>>, vector<1x8x32xf32>
      %96 = vector.shape_cast %95 : vector<1x8x32xf32> to vector<8x32xf32>
      %97 = vector.shape_cast %94 : vector<8x32xf32> to vector<1x8x32xf32>
      tpu.vector_store %arg11[%c0_41, %c0_42, %c0_43], %97 {strides = array<i32>} : memref<1x8x32xf32, #tpu.memory_space<vmem>>, vector<1x8x32xf32>,
    } else {
    }
    return
  }
  func.func @transform_0(%arg0: i32, %arg1: i32) -> (i32, i32, i32) {
    %c0_i32 = arith.constant 0 : i32
    %c0_i32_0 = arith.constant 0 : i32
    %c0_i32_1 = arith.constant 0 : i32
    return %arg0, %c0_i32, %c0_i32_0 : i32, i32, i32
  }
  func.func @transform_1(%arg0: i32, %arg1: i32) -> (i32, i32) {
    %c0_i32 = arith.constant 0 : i32
    %c0_i32_0 = arith.constant 0 : i32
    %c0_i32_1 = arith.constant 0 : i32
    return %c0_i32, %c0_i32_0 : i32, i32
  }
  func.func @transform_2(%arg0: i32, %arg1: i32) -> (i32, i32, i32) {
    %c0_i32 = arith.constant 0 : i32
    %c0_i32_0 = arith.constant 0 : i32
    %c0_i32_1 = arith.constant 0 : i32
    return %arg1, %c0_i32, %c0_i32_0 : i32, i32, i32
  }
  func.func @transform_3(%arg0: i32, %arg1: i32) -> (i32, i32, i32) {
    %c0_i32 = arith.constant 0 : i32
    %c0_i32_0 = arith.constant 0 : i32
    %c0_i32_1 = arith.constant 0 : i32
    return %arg1, %c0_i32, %c0_i32_0 : i32, i32, i32
  }
  func.func @transform_4(%arg0: i32, %arg1: i32) -> (i32, i32) {
    %c0_i32 = arith.constant 0 : i32
    %c0_i32_0 = arith.constant 0 : i32
    %c0_i32_1 = arith.constant 0 : i32
    return %c0_i32, %c0_i32_0 : i32, i32
  }
  func.func @transform_5(%arg0: i32, %arg1: i32) -> (i32, i32) {
    %c0_i32 = arith.constant 0 : i32
    %c0_i32_0 = arith.constant 0 : i32
    %c0_i32_1 = arith.constant 0 : i32
    return %c0_i32, %c0_i32_0 : i32, i32
  }
  func.func @transform_6(%arg0: i32, %arg1: i32) -> (i32, i32) {
    %c0_i32 = arith.constant 0 : i32
    %c0_i32_0 = arith.constant 0 : i32
    %c0_i32_1 = arith.constant 0 : i32
    return %c0_i32, %c0_i32_0 : i32, i32
  }
  func.func @transform_7(%arg0: i32, %arg1: i32) -> (i32, i32) {
    %c0_i32 = arith.constant 0 : i32
    %c0_i32_0 = arith.constant 0 : i32
    %c0_i32_1 = arith.constant 0 : i32
    return %c0_i32, %c0_i32_0 : i32, i32
  }
  func.func @transform_8(%arg0: i32, %arg1: i32) -> (i32, i32) {
    %c0_i32 = arith.constant 0 : i32
    %c0_i32_0 = arith.constant 0 : i32
    %c0_i32_1 = arith.constant 0 : i32
    return %c0_i32, %c0_i32_0 : i32, i32
  }
  func.func @transform_9(%arg0: i32, %arg1: i32) -> (i32, i32, i32) {
    %c0_i32 = arith.constant 0 : i32
    %c0_i32_0 = arith.constant 0 : i32
    %c0_i32_1 = arith.constant 0 : i32
    return %arg0, %c0_i32, %c0_i32_0 : i32, i32, i32
  }
}

</mosaic_0001>

<bundles_post_ra>
// kernel: tpu_custom_call.1
= control target key start
LH: loop header
LB: loop body
LE: loop exit
PB: predicated region body
PF: predicated region fallthrough
CT: control target
= control target key end

     0   :  { %14 = vsyncpa [#allocation4], 0  ;;  %s1620_s0 = inlined_call_operand.vmem [shape: f32[2,8,32], index: 0, kind: input, shape index: {}]   ;;  %s1621_s1 = inlined_call_operand.vmem [shape: f32[1,32], index: 1, kind: input, shape index: {}]   ;;  %s1622_s2 = inlined_call_operand.vmem [shape: bf16[4,32,24], index: 2, kind: input, shape index: {}]   ;;  %s1623_s3 = inlined_call_operand.vmem [shape: bf16[4,8,32], index: 3, kind: input, shape index: {}]   ;;  %s1624_s4 = inlined_call_operand.vmem [shape: f32[1,32], index: 4, kind: input, shape index: {}]   ;;  %s1625_s5 = inlined_call_operand.vmem [shape: bf16[32,128], index: 5, kind: input, shape index: {}]   ;;  %s1626_s6 = inlined_call_operand.vmem [shape: bf16[64,32], index: 6, kind: input, shape index: {}]   ;;  %s1627_s7 = inlined_call_operand.vmem [shape: f32[8,4], index: 7, kind: input, shape index: {}]   ;;  %s1628_s8 = inlined_call_operand.vmem [shape: f32[8,4], index: 8, kind: input, shape index: {}]   ;;  %s1629_s9 = inlined_call_operand.hbm [shape: f32[2,8,32], index: 9, kind: output, shape index: {}]  }
   0x1   :  { %16 = vsyncpa [#allocation4 + $0x1], 0  ;;  %s1396_s30 = smov 0   ;;  %s1398_s10 = smov 0  }
   0x2   :  { %s1400_s11 = smov 0   ;;  %s1402_s12 = smov 0  }
   0x3   :  { %s1404_s13 = smov 0   ;;  %s1406_s14 = smov 0  }
   0x4   :  { %s1408_s15 = smov 0   ;;  %s1410_s16 = smov 0  }
   0x5 LB: > { %1637 = sst [smem:[#allocation6_spill]] %s1303_s30  ;;  %s1024_s17 = sadd.s32 4294967295, %s1331_s16   ;;  %s1331_s16 = sphi %s1410_s16, %s22_s16   ;;  %s1327_s15 = sphi %s1408_s15, %s1655_s15   ;;  %s1323_s14 = sphi %s1406_s14, %s1654_s14   ;;  %s1319_s13 = sphi %s1404_s13, %s1653_s13   ;;  %s1315_s12 = sphi %s1402_s12, %s1658_s12   ;;  %s1311_s11 = sphi %s1400_s11, %s1651_s11   ;;  %s1307_s10 = sphi %s1398_s10, %s1657_s10   ;;  %s1303_s30 = sphi %s1396_s30, %s1656_s30  }
   0x6   : > { %1638 = sst [smem:[#allocation7_spill]] %s1311_s11  ;;  %s1025_s18 = sadd.s32 4294967294, %s1331_s16  }
   0x7   : > { %1639 = sst [smem:[#allocation8_spill]] %s1323_s14  ;;  %s31_s19 = sadd.s32 1, %s1323_s14 }
   0x8   : > { %1640 = sst [smem:[#allocation9_spill]] %s1327_s15  ;;  %p32_p0 = scmp.ge.s32.totalorder %s31_s19, 4 }
   0x9   : > { %s34_s20 = sadd.s32 1, %s1327_s15  ;;  %p255_p1 = scmp.ne.s32.totalorder %s1311_s11, %s1307_s10 }
   0xa   : > { %p256_p2 = scmp.eq.s32.totalorder %s1024_s17, 7  ;;  %s1660_s19 = smov (%p32_p0, %s31_s19), 0 }
   0xb   : > { %1641 = sst [smem:[#allocation10_spill]] %s1660_s19  ;;  %s1662_s20 = smov (!%p32_p0, %s34_s20), %s1327_s15 }
   0xc   : > { %p1445_p3 = por %p256_p2, %p255_p1  ;;  %p261_p4 = scmp.ne.s32.totalorder %s1307_s10, %s1303_s30 }
   0xd   : > { %p36_p5 = scmp.ge.s32.totalorder %s1662_s20, 2  ;;  %p262_p6 = scmp.eq.s32.totalorder %s1025_s18, 7 }
   0xe   : > { %p1028_p7 = scmp.ge.s32.totalorder %s1331_s16, 1  ;;  %p320_p8 = scmp.lt.s32.totalorder %s1331_s16, 9 }
   0xf   : > { %s1664_s20 = smov (%p36_p5, %s1662_s20), 0  ;;  %p1455_p9 = por %p262_p6, %p261_p4 }
  0x10   : > { %1643 = sst [smem:[#allocation11_spill]] %s1664_s20  ;;  %p321_p10 = pnand %p1028_p7, %p320_p8 }
  0x11   : > { %s1644_s22 = scalar_select %p1455_p9, 1, 0 }
  0x12   : > { %s242_s23 = ssub.s32 %s1327_s15, %s1664_s20  ;;  %s245_s24 = sadd.s32 1, %s1311_s11 }
  0x13   : > { %1645 = sst [smem:[#allocation12_spill]] %s1644_s22  ;;  %p243_p11 = scmp.eq.s32.totalorder %s242_s23, 0 }
  0x14   : > { %324 = sbr.rel (%p321_p10) target bundleno = 2378 (0x94a), region = 56  ;;  %s1636_s26 = sand.u32 (!%p321_p10), 1, %s1307_s10  }
  0x15   : > { %s1463_s25 = scalar_select %p243_p11, %s1311_s11, %s245_s24  }
  0x16   : > { %p364_p12 = scmp.lt.s32.totalorder (!%p321_p10), %s1319_s13, 1  ;;  %s1029_s27 = sshll.u32 (!%p321_p10), %s1636_s26, 3 }
  0x17   : > { %1646 = sst [smem:[#allocation13_spill]] %s1463_s25  ;;  %p368_p13 = scmp.lt.s32.totalorder (!%p321_p10), %s1315_s12, 3 }
  0x18   : > { %s1483_s26 = scalar_lea.vmem (!%p321_p10), [#allocation3], %s1029_s27  ;;  %p1034_p0 = scmp.ne.s32.totalorder (!%p321_p10), %s1315_s12, 0 }
  0x1b   : > { %s365_s28 = scalar_select %p364_p12, %s1319_s13, 1 }
  0x1c   : > { %s369_s29 = scalar_select %p368_p13, %s1315_s12, 3 }
  0x1d   : > { %s1030_s17 = sshll.u32 %s365_s28, 3  ;;  %381 = sbr.rel (%p1034_p0) target bundleno = 199 (0xc7), region = 60  ;;  %vm385_vm0 = vcmask (!%p1034_p0), 261120   ;;  %v1035_v7 = vld [vmem:[%s1621_s1] ss:$0 sm:$0xff] (!%p1034_p0)  ;;  %vm402_vm1 = vcmask (!%p1034_p0), 257024  }
  0x1e   : > { %s367_s23 = scalar_lea.vmem %s1620_s0, %s1030_s17  ;;  %s1058_s24 = sshll.u32 %s369_s29, 4 }
  0x1f   : > { %s372_s14 = scalar_lea.vmem %s1622_s2, %s1058_s24  ;;  %s1033_s25 = sshll.u32 %s369_s29, 2  ;;  %v382_v0 = vld [vmem:[%s367_s23] sm:$0xff] (!%p1034_p0) }
  0x20   : > { %s1481_s30 = scalar_lea.vmem %s1623_s3, %s1033_s25  ;;  %v384_v1 = vmul.f32 (!%p1034_p0), %v382_v0, %v382_v0  ;;  %404 = vst.msk [vmem:[%s1483_s26] sm:$0xff] (!%p1034_p0), %vm385_vm0, %v382_v0 }
  0x22   : > { %v386_v2 = vsel (!%p1034_p0), %vm385_vm0, %v384_v1, 0.0 }
  0x23   : > { %387 = vadd.xlane.f32.xlu0 (!%p1034_p0), %v386_v2 }
  0xb0   : > { %v388_v3 = vpop.xlane.xlu0 %387 }
  0xb1   : > { %v390_v4 = vmul.f32 0.03125, %v388_v3 }
  0xb3   : > { %v391_v5 = vadd.f32 1e-05, %v390_v4 }
  0xb5   : > { %1217 = vrsqrt.f32 %v391_v5 }
  0xbf   : > { %v1218_v6 = vpop.eup %1217 }
  0xc0   : > { %v393_v8 = vmul.f32 %v1218_v6, %v382_v0 }
  0xc2   : > { %v400_v9 = vmul.f32 %v1035_v7, %v393_v8 }
  0xc4   : > { %v401_v10 = vpack.c.bf16 %v400_v9, %v400_v9 }
  0xc6   : > { %403 = vst.msk [vmem:[#allocation2] sm:$0xf] %vm402_vm1, %v401_v10 }
  0xc7 PF: > { %v1219_v11 = vld [vmem:[%s372_s14] sm:$0xff]   ;;  %v1333_v12 = vmov 0.0   ;;  %v1220_v13 = vld [vmem:[%s372_s14 + $0x8] sm:$0xff]   ;;  %vm1334_vm2 = vmmov 0   ;;  %s1335_s22 = smov 8   ;;  %s1336_s28 = smov 12   ;;  %v623_v52 = vlaneseq }
  0xc8   : > { %1078 = vmatprep.subr.bf16.mxu0 %v1333_v12  ;;  %1086 = vmatprep.subr.bf16.mxu1 %v1333_v12  ;;  %v468_v14 = vld [vmem:[%s1628_s8] sm:$0xff]  ;;  %vm422_vm3 = vcmask 261120   ;;  %s1337_s14 = smov 4   ;;  %s1338_s29 = smov 124   ;;  %vm527_vm4 = vcmask 31744   ;;  %vm629_vm6 = vcmask 64512  }
  0xc9   : > { %1079 = vmatpush3.bf16.msra.mxu0 %v1219_v11  ;;  %1082 = vmatprep.mubr.msk.bf16.mxu0 %vm1334_vm2, %v1333_v12  ;;  %v1501_v15 = vld [vmem:[%s1627_s7] sm:$0xff]  ;;  %s1339_s17 = smov 116   ;;  %s1340_s18 = smov 120   ;;  %v624_v53 = vshrl.u32 %v623_v52, 7  ;;  %v626_v54 = vand.u32 127, %v623_v52  ;;  %vm648_vm7 = vcmask 1043456  }
  0xca   : > { %1080 = vmatprep.subr.bf16.mxu0 %v1333_v12  ;;  %511 = vrot.lane.b32.xlu0 %v468_v14, %s1335_s22  ;;  %s1341_s23 = smov 112   ;;  %v694_v7 = vld [vmem:[%s1481_s30] sm:$0xf]  ;;  %p1043_p1 = scmp.ne.s32.totalorder %s1315_s12, 3 }
  0xcb   : > { %507 = vrot.lane.b32.xlu1 %v1501_v15, %s1336_s28  ;;  %1088 = vmatprep.mubr.msk.bf16.mxu1 %vm1334_vm2, %v1333_v12  ;;  %vm627_vm5 = vcmp.le.s32.totalorder %v626_v54, %v624_v53  ;;  %v699_v9 = vsel %vm648_vm7, %v694_v7, 0  ;;  %vm1343_vm8 = vmmov (!%p1043_p1), 0   ;;  %vm870_vm9 = vcmask (!%p1043_p1), 523264  }
  0xcd   : > { %1081 = vmatpush3.bf16.msra.mxu0 %v1220_v13  ;;  %v405_v16 = vld [vmem:[#allocation2] sm:$0xf] }
  0xce   : > { %497 = vrot.lane.b32.xlu0 %v468_v14, %s1336_s28  ;;  %1098 = vmatprep.subr.bf16.mxu0 %v1333_v12 }
  0xd0   : > { %1083 = vmatmul.mubr.msk.bf16.vlgmr.msra.gmra.mrb[0].mxu0 %vm422_vm3, %v405_v16 }
  0xd1   : > { %1100 = vmatprep.mubr.msk.bf16.mxu0 %vm1334_vm2, %v1333_v12 }
  0xd2   : > { %482 = vrot.lane.b32.xlu0 %v1501_v15, %s1337_s14 }
  0xd6   : > { %493 = vrot.lane.b32.xlu0 %v1501_v15, %s1335_s22 }
  0xda   : > { %471 = vrot.lane.b32.xlu0 %v468_v14, %s1337_s14 }
 0x13c   : > { %v512_v17 = vpop.permute.xlu0 %511 }
 0x13d   : > { %v508_v27 = vpop.permute.xlu1 %507 }
 0x140   : > { %v498_v24 = vpop.permute.xlu0 %497 }
 0x144   : > { %v483_v26 = vpop.permute.xlu0 %482 }
 0x148   : > { %v494_v31 = vpop.permute.xlu0 %493 }
 0x14c   : > { %v472_v38 = vpop.permute.xlu0 %471 }
 0x1a3   : > { %v1512_v18 = vpop.f32.mrb[0].mxu0 }
 0x1a4   : > { %v1084_v19 = vpop.f32.mrb[1].mxu0  ;;  %v514_v20 = vmul.f32 %v512_v17, %v1512_v18  ;;  %v486_v23 = vmul.f32 %v468_v14, %v1512_v18  ;;  %v500_v25 = vmul.f32 %v498_v24, %v1512_v18  ;;  %v510_v28 = vmul.f32 %v508_v27, %v1512_v18  ;;  %v692_v17 = vld [vmem:[%s1483_s26] sm:$0xff] }
 0x1a5   : > { %v463_v21 = vpop.f32.mrb[2].mxu0  ;;  %v485_v33 = vmul.f32 %v483_v26, %v1512_v18  ;;  %v496_v37 = vmul.f32 %v494_v31, %v1512_v18  ;;  %v474_v42 = vmul.f32 %v472_v38, %v1512_v18  ;;  %v469_v49 = vmul.f32 %v1501_v15, %v1512_v18  ;;  %v1226_v27 = vld [vmem:[%s1625_s5 + $0x8] sm:$0xff] (!%p1043_p1)   ;;  %v1229_v38 = vld [vmem:[%s1626_s6 + $0x10] sm:$0xff] (!%p1043_p1)  }
 0x1a6   : > { %516 = vrot.lane.b32.xlu1 %v514_v20, %s1337_s14  ;;  %v1085_v22 = vpop.f32.mrb[3].mxu0  ;;  %v466_v2 = vpack.c.bf16 %v1512_v18, %v1512_v18  ;;  %v1342_v26 = vmov (!%p1043_p1), 0.0  }
 0x1aa   : > { %488 = vrot.lane.b32.xlu1 %v486_v23, %s1337_s14 }
 0x1ae   : > { %502 = vrot.lane.b32.xlu1 %v500_v25, %s1338_s29  ;;  %v1225_v25 = vld [vmem:[%s1625_s5] sm:$0xff] (!%p1043_p1)  }
 0x218   : > { %v517_v29 = vpop.permute.xlu1 %516 }
 0x219   : > { %v519_v30 = vadd.f32 %v517_v29, %v510_v28 }
 0x21b   : > { %v520_v32 = vpack.c.bf16 %v519_v30, %v519_v30 }
 0x21c   : > { %v489_v34 = vpop.permute.xlu1 %488 }
 0x21d   : > { %v491_v35 = vadd.f32 %v489_v34, %v485_v33  ;;  %525 = vrot.lane.b32.xlu1 %v520_v32, %s1339_s17  ;;  %v1044_v32 = vld [vmem:[%s1624_s4] ss:$0 sm:$0xff] (!%p1043_p1) }
 0x21f   : > { %v492_v36 = vpack.c.bf16 %v491_v35, %v491_v35 }
 0x220   : > { %v503_v39 = vpop.permute.xlu1 %502 }
 0x221   : > { %v505_v40 = vsub.f32 %v496_v37, %v503_v39  ;;  %522 = vrot.lane.b32.xlu0 %v492_v36, %s1338_s29  ;;  %v1227_v36 = vld [vmem:[%s1626_s6] sm:$0xff] (!%p1043_p1)   ;;  %v1228_v37 = vld [vmem:[%s1626_s6 + $0x8] sm:$0xff] (!%p1043_p1)   ;;  %v1230_v39 = vld [vmem:[%s1626_s6 + $0x18] sm:$0xff] (!%p1043_p1)  }
 0x223   : > { %v506_v41 = vpack.c.bf16 %v505_v40, %v505_v40 }
 0x225   : > { %575 = vrot.lane.b32.xlu1 %v506_v41, %s1340_s18  ;;  %476 = vrot.lane.b32.xlu0 %v474_v42, %s1338_s29  ;;  %s1344_s18 = smov (!%p1043_p1), 64  }
 0x28f   : > { %v526_v43 = vpop.permute.xlu1 %525 }
 0x290   : > { %v532_v44 = vsel %vm527_vm4, %v526_v43, 0 }
 0x291   : > { %1087 = vmatpush3.bf16.xpose.msra.mxu1 %v532_v44 }
 0x292   : > { %1092 = vmatprep.subr.bf16.mxu1 %v1333_v12 }
 0x293   : > { %v523_v45 = vpop.permute.xlu0 %522 }
 0x297   : > { %v576_v46 = vpop.permute.xlu1 %575  ;;  %v477_v48 = vpop.permute.xlu0 %476 }
 0x298   : > { %v581_v47 = vsel %vm527_vm4, %v576_v46, 0  ;;  %1089 = vmatmul.mubr.msk.bf16.vlgmr.msra.gmra.mrb[0].mxu1 %vm527_vm4, %v523_v45  ;;  %v479_v50 = vsub.f32 %v469_v49, %v477_v48 }
 0x299   : > { %1093 = vmatpush3.bf16.xpose.msra.mxu1 %v581_v47  ;;  %1094 = vmatprep.mubr.msk.bf16.mxu1 %vm1334_vm2, %v1333_v12 }
 0x29a   : > { %v480_v51 = vpack.c.bf16 %v479_v50, %v479_v50  ;;  %1118 = vmatprep.subr.bf16.mxu1 (!%p1043_p1), %v1342_v26 }
 0x2a4   : > { %1095 = vmatmul.mubr.msk.bf16.vlgmr.msra.gmra.mrb[0].mxu1 %vm527_vm4, %v480_v51 }
 0x2a5   : > { %1126 = vmatprep.mubr.msk.bf16.mxu1 (!%p1043_p1), %vm1343_vm8, %v1342_v26  ;;  %1119 = vmatpush3.bf16.msra.mxu1 (!%p1043_p1), %v1227_v36 }
 0x2a6   : > { %1120 = vmatprep.subr.bf16.mxu1 (!%p1043_p1), %v1342_v26 }
 0x2a9   : > { %1121 = vmatpush3.bf16.msra.mxu1 (!%p1043_p1), %v1228_v37 }
 0x2aa   : > { %1122 = vmatprep.subr.bf16.mxu1 (!%p1043_p1), %v1342_v26 }
 0x2ad   : > { %1123 = vmatpush3.bf16.msra.mxu1 (!%p1043_p1), %v1229_v38 }
 0x2ae   : > { %1124 = vmatprep.subr.bf16.mxu1 (!%p1043_p1), %v1342_v26 }
 0x2b1   : > { %1125 = vmatpush3.bf16.msra.mxu1 (!%p1043_p1), %v1230_v39 }
 0x377   : > { %v617_v55 = vpop.f32.mrb[0].mxu1 }
 0x378   : > { %v628_v56 = vsel %vm627_vm5, %v617_v55, -1e+30  ;;  %v1096_v57 = vpop.f32.mrb[1].mxu1 }
 0x379   : > { %v620_v58 = vpop.f32.mrb[2].mxu1  ;;  %v630_v59 = vsel %vm629_vm6, %v628_v56, -inf }
 0x37a   : > { %631 = vmax.xlane.f32.xlu1 %v630_v59  ;;  %v1097_v60 = vpop.f32.mrb[3].mxu1 }
 0x407   : > { %v632_v61 = vpop.xlane.xlu1 %631 }
 0x408   : > { %v633_v62 = vsub.f32 %v628_v56, %v632_v61 }
 0x40a   : > { %v634_v63 = vmul.f32 1.442695, %v633_v62 }
 0x40c   : > { %1221 = vpow2.f32 %v634_v63 }
 0x416   : > { %v1222_v0 = vpop.eup %1221 }
 0x417   : > { %v636_v1 = vsel %vm629_vm6, %v1222_v0, 0.0 }
 0x418   : > { %637 = vadd.xlane.f32.xlu0 %v636_v1 }
 0x42e   : > { %643 = vrot.lane.b32.xlu0 %v466_v2, %s1341_s23 }
 0x4a5   : > { %v638_v3 = vpop.xlane.xlu0 %637 }
 0x4a6   : > { %1223 = vrcp.f32 %v638_v3 }
 0x4a9   : > { %v644_v4 = vpop.permute.xlu0 %643 }
 0x4aa   : > { %v650_v5 = vsel %vm648_vm7, %v644_v4, 0 }
 0x4ab   : > { %1099 = vmatpush3.bf16.msra.mxu0 %v650_v5 }
 0x4ac   : > { %1104 = vmatprep.subr.bf16.mxu0 %v1333_v12 }
 0x4b0   : > { %v1224_v6 = vpop.eup %1223 }
 0x4b1   : > { %v640_v8 = vmul.f32 %v1224_v6, %v1222_v0 }
 0x4b3   : > { %v641_v10 = vpack.c.bf16 %v640_v8, %v640_v8 }
 0x4b5   : > { %1101 = vmatmul.mubr.msk.bf16.vlgmr.msra.gmra.mrb[4].mxu0 %vm629_vm6, %v641_v10 }
 0x4b6   : > { %1105 = vmatpush3.bf16.msra.mxu0 %v699_v9  ;;  %1106 = vmatprep.mubr.msk.bf16.mxu0 %vm1334_vm2, %v1333_v12 }
 0x4b7   : > { %1110 = vmatprep.subr.bf16.mxu0 (!%p1043_p1), %v1342_v26 }
 0x588   : > { %v686_v11 = vpop.f32.mrb[4].mxu0 }
 0x589   : > { %v693_v13 = vpack.c.bf16 %v686_v11, %v686_v11  ;;  %v1102_v14 = vpop.f32.mrb[5].mxu0 }
 0x58a   : > { %v689_v15 = vpop.f32.mrb[6].mxu0 }
 0x58b   : > { %v1103_v16 = vpop.f32.mrb[7].mxu0  ;;  %1107 = vmatmul.mubr.msk.bf16.vlgmr.msra.gmra.mrb[8].mxu0 %vm629_vm6, %v693_v13 }
 0x58c   : > { %1114 = vmatprep.mubr.msk.bf16.mxu0 (!%p1043_p1), %vm1343_vm8, %v1342_v26  ;;  %1111 = vmatpush3.bf16.msra.mxu0 (!%p1043_p1), %v1225_v25 }
 0x58d   : > { %1112 = vmatprep.subr.bf16.mxu0 (!%p1043_p1), %v1342_v26 }
 0x590   : > { %1113 = vmatpush3.bf16.msra.mxu0 (!%p1043_p1), %v1226_v27 }
 0x65b   : > { %746 = sbr.rel (%p1043_p1) target bundleno = 2353 (0x931), region = 64 }
 0x65e   : > { %v735_v18 = vpop.f32.mrb[8].mxu0 }
 0x65f   : > { %v741_v19 = vadd.f32 %v735_v18, %v692_v17  ;;  %v1108_v20 = vpop.f32.mrb[9].mxu0 }
 0x660   : > { %v738_v21 = vpop.f32.mrb[10].mxu0 }
 0x661   : > { %742 = vst.msk [vmem:[%s1483_s26] sm:$0xff] %vm422_vm3, %v741_v19  ;;  %v1109_v22 = vpop.f32.mrb[11].mxu0 }
 0x668   : > { %v747_v12 = vld [vmem:[%s1483_s26] sm:$0xff] }
 0x669   : > { %v749_v23 = vmul.f32 %v747_v12, %v747_v12 }
 0x66b   : > { %v750_v24 = vsel %vm422_vm3, %v749_v23, 0.0 }
 0x66c   : > { %751 = vadd.xlane.f32.xlu0 %v750_v24 }
 0x6f9   : > { %v752_v28 = vpop.xlane.xlu0 %751 }
 0x6fa   : > { %v754_v29 = vmul.f32 0.03125, %v752_v28 }
 0x6fc   : > { %v755_v30 = vadd.f32 1e-05, %v754_v29 }
 0x6fe   : > { %1231 = vrsqrt.f32 %v755_v30 }
 0x708   : > { %v1232_v31 = vpop.eup %1231 }
 0x709   : > { %v757_v33 = vmul.f32 %v1232_v31, %v747_v12 }
 0x70b   : > { %v764_v34 = vmul.f32 %v1044_v32, %v757_v33 }
 0x70d   : > { %v765_v35 = vpack.c.bf16 %v764_v34, %v764_v34 }
 0x70f   : > { %1115 = vmatmul.mubr.msk.bf16.vlgmr.msra.gmra.mrb[0].mxu0 %vm422_vm3, %v765_v35 }
 0x7e2   : > { %v819_v40 = vpop.f32.mrb[0].mxu0 }
 0x7e3   : > { %833 = vrot.lane.b32.xlu0 %v819_v40, %s1344_s18  ;;  %v1116_v41 = vpop.f32.mrb[1].mxu0  ;;  %v1048_v44 = vmul.f32 -1.442695, %v819_v40 }
 0x7e4   : > { %v822_v42 = vpop.f32.mrb[2].mxu0 }
 0x7e5   : > { %v1117_v43 = vpop.f32.mrb[3].mxu0  ;;  %1233 = vpow2.f32 %v1048_v44 }
 0x7ef   : > { %v1234_v45 = vpop.eup %1233 }
 0x7f0   : > { %v828_v46 = vadd.f32 1.0, %v1234_v45 }
 0x7f2   : > { %1235 = vrcp.f32 %v828_v46 }
 0x7fc   : > { %v1236_v47 = vpop.eup %1235 }
 0x7fd   : > { %v831_v48 = vmul.f32 %v1236_v47, %v819_v40 }
 0x855   : > { %v834_v49 = vpop.permute.xlu0 %833 }
 0x856   : > { %v836_v50 = vmul.f32 %v834_v49, %v831_v48 }
 0x858   : > { %v837_v51 = vpack.c.bf16 %v836_v50, %v836_v50 }
 0x85a   : > { %1127 = vmatmul.mubr.msk.bf16.vlgmr.msra.gmra.mrb[0].mxu1 %vm870_vm9, %v837_v51 }
 0x92d   : > { %v908_v52 = vpop.f32.mrb[0].mxu1 }
 0x92e   : > { %v914_v53 = vadd.f32 %v908_v52, %v747_v12  ;;  %v1128_v54 = vpop.f32.mrb[1].mxu1 }
 0x92f   : > { %v911_v55 = vpop.f32.mrb[2].mxu1 }
 0x930   : > { %915 = vst.msk [vmem:[%s1483_s26] sm:$0xff] %vm422_vm3, %v914_v53  ;;  %v1129_v56 = vpop.f32.mrb[3].mxu1 }
 0x931 PF: > { %s1055_s23 = sshll.u32 %s1319_s13, 7  ;;  %s930_s15 = sshll.u32 %s1483_s26, 4  ;;  %s931_s15 = int_to_ptr.vmem [resolvable:$true] %s930_s15 }
 0x932   : > { %s1570_s11 = scalar_lea.hbm %s1629_s9, %s1055_s23  ;;  %s1647_s12 = sand.u32 1, %s1307_s10  }
 0x933   : > { %s917_s19 = scalar_lea.sflag [#allocation4], %s1647_s12  ;;  %s1237_s20 = scalar_lea.vmem %s931_s15, 128 }
 0x934   : > { %p1238_p2 = scmp.ne.s32.totalorder %s931_s15, %s1237_s20  ;;  %s1345_s22 = smov [#allocation3]  }
 0x935   : > { %s1241_s25 = sshll.u32 %s1345_s22, 4  ;;  %s1242_s25 = int_to_ptr.vmem [resolvable:$false] %s1241_s25 }
 0x936   : > { %p1239_p4 = pnand %p1238_p2, %p1445_p3  ;;  %s1243_s27 = scalar_lea.vmem %s1242_s25, 256 }
 0x937   : > { %p1244_p6 = scmp.lt.s32.totalorder %s931_s15, %s1242_s25  ;;  %p1245_p7 = scmp.lt.s32.totalorder %s1243_s27, %s1237_s20 }
 0x938   : > { %p1240_p5 = pneg %p1239_p4 }
 0x939   : > { %p1246_p8 = por %p1245_p7, %p1244_p6 }
 0x93b   : > { %p1247_p10 = pnand %p1246_p8, %p1240_p5 }
 0x93d   : > { %1250 = shalt.err (!%p1247_p10)
}
 0x93e   : > { %s1251_s13 = scalar_lea.hbm %s1570_s11, 128  ;;  %s1255_s14 = scalar_lea.hbm %s1629_s9, 256 }
 0x93f   : > { %p1252_p11 = scmp.ne.s32.totalorder %s1570_s11, %s1251_s13  ;;  %p1256_p0 = scmp.lt.u32.totalorder %s1570_s11, %s1629_s9 }
 0x940   : > { %p1257_p1 = scmp.lt.u32.totalorder %s1255_s14, %s1251_s13  ;;  %p1259_p4 = scmp.lt.u32.totalorder %s1251_s13, %s1570_s11 }
 0x941   : > { %p1253_p12 = pnand %p1252_p11, %p1445_p3 }
 0x942   : > { %p1258_p2 = por %p1257_p1, %p1256_p0 }
 0x943   : > { %p1254_p13 = pneg %p1253_p12 }
 0x944   : > { %p1260_p5 = por %p1259_p4, %p1258_p2 }
 0x946   : > { %p1261_p6 = pnand %p1260_p5, %p1254_p13 }
 0x948   : > { %1264 = shalt.err (!%p1261_p6)
}
 0x949   : > { %1134 = dma.vmem_to_hbm [thread:$0]  (%p1445_p3), %s931_s15, 128, %s1570_s11, %s917_s19  }
 0x94a PF: > { %s1648_s18 = sld [smem:[#allocation6_spill]]  ;;  %p1140_p7 = scmp.ge.s32.totalorder %s1331_s16, 2 }
 0x94c   : > { %p1137_p8 = pnand %p1140_p7, %p1455_p9 }
 0x950   : > { %s942_s30 = sand.u32 1, %s1648_s18  }
 0x951   : > { %s943_s24 = scalar_lea.sflag [#allocation4], %s942_s30 }
 0x952   : > { %1298 = dma.done.wait (!%p1137_p8), %s943_s24, 128  }
 0x953   : > { %1300 = vsyncadd (!%p1137_p8), %s943_s24, 4294967168  ;;  %s22_s16 = sadd.s32 1, %s1331_s16   ;;  %s1650_s12 = sld [smem:[#allocation7_spill]] }
 0x954   : > { %p19_p10 = scmp.ge.s32.totalorder %s22_s16, 10   ;;  %s1651_s11 = sld [smem:[#allocation13_spill]] }
 0x955   : > { %s1652_s21 = sld [smem:[#allocation8_spill]]  ;;  %s1653_s13 = sld [smem:[#allocation9_spill]] }
 0x956   : > { %s1654_s14 = sld [smem:[#allocation10_spill]]  ;;  %s1655_s15 = sld [smem:[#allocation11_spill]] }
 0x957   : > { %s1656_s30 = smov %s1307_s10  ;;  %21 = sbr.rel (!%p19_p10) target bundleno = 5 (0x5), region = 105 }
 0x959   : > { %s1657_s10 = smov %s1650_s12 }
 0x95b   : > { %s1658_s12 = smov %s1652_s21 }
 0x95e   :  { %948 = vsyncpa [#allocation4], 1 }
 0x95f   :  { %950 = vsyncpa [#allocation4 + $0x1], 1 }

</bundles_post_ra>
